<compile_context>
chip_gen: v7x
topology: tpu7x:2x2x1
jax: 0.10.0
libtpu: 0.0.40
codegen_flags: <defaults>
</compile_context>

<pallas_src>
import jax
import jax.numpy as jnp
from jax.experimental import pallas as pl
from jax.experimental.pallas import tpu as pltpu


def _round_up(x, m):
    return ((x + m - 1) // m) * m


def _choose_length_tile(L):
    """Largest lane-dense (multiple-of-128) tile dividing L, capped at 1024.

    Irregular L falls back to a cdiv grid: 512-lane tiles with a clipped tail
    tile, or a single rounded-up tile for short L.
    """
    for lt in (1024, 512, 384, 256, 128):
        if L % lt == 0:
            return lt
    if L < 512:
        return _round_up(L, 128)
    return 512


def _make_tcn_kernel(K, d, pad, L, Lt, C_in, C_out, x_off, Lbuf,
                     has_downsample):
    Le = Lt + 2 * pad            # conv1 tile incl. the halo conv2 needs
    SH = x_off - 2 * pad         # static left shift of the window in the slab
    Lslab = SH + Lt + 4 * pad    # lanes loaded per tile (128-aligned start)

    def body(x_hbm, w1_ref, b1_ref, w2_ref, b2_ref, wd_ref, bd_ref,
             o_ref, xbuf_ref, dma_sem):
        n = pl.program_id(0)
        j = pl.program_id(1)

        # ---- stage this batch element's row HBM -> VMEM once (first tile) ---
        @pl.when(j == 0)
        def _():
            if x_off > 0:                       # left zero halo
                xbuf_ref[:, 0:x_off] = jnp.zeros((C_in, x_off), jnp.float32)
            if Lbuf > x_off + L:                # right zero halo / tail pad
                xbuf_ref[:, x_off + L:Lbuf] = jnp.zeros(
                    (C_in, Lbuf - x_off - L), jnp.float32)
            cp = pltpu.make_async_copy(
                x_hbm.at[n], xbuf_ref.at[:, x_off:x_off + L], dma_sem)
            cp.start()
            cp.wait()

        # ---- load the 128-aligned slab covering this tile + halos -----------
        base = pl.multiple_of(j * Lt, 128)
        slab = xbuf_ref[:, pl.ds(base, Lslab)]             # (C_in, Lslab) f32
        slab_b = slab.astype(jnp.bfloat16)                 # MXU operand dtype

        # ---- conv1 (dilated) + bias + ReLU over the expanded tile -----------
        # One fused MXU matmul: K taps stacked on the sublane (contraction)
        # axis -> contraction dim K*C_in instead of K separate matmuls.
        stacked1 = jnp.concatenate(
            [slab_b[:, SH + t * d: SH + t * d + Le] for t in range(K)],
            axis=0)                                        # (K*C_in, Le)
        h1 = jnp.maximum(
            jnp.dot(w1_ref[...], stacked1,
                    preferred_element_type=jnp.float32) + b1_ref[...],
            0.0)                                           # (C_out, Le) f32

        # conv2's padding must be zero OUTSIDE [0, L) (PyTorch zero-pads the
        # conv1 *output*, not relu(bias)); mask halo/tail lanes outside [0, L).
        if pad > 0:
            g = (j * Lt - pad) + jax.lax.broadcasted_iota(jnp.int32, (1, Le), 1)
            h1 = jnp.where((g >= 0) & (g < L), h1, 0.0)
        h1b = h1.astype(jnp.bfloat16)

        # ---- conv2 (dilated) + bias + ReLU -----------------------------------
        stacked2 = jnp.concatenate(
            [h1b[:, t * d: t * d + Lt] for t in range(K)], axis=0)
        h2 = jnp.maximum(
            jnp.dot(w2_ref[...], stacked2,
                    preferred_element_type=jnp.float32) + b2_ref[...],
            0.0)                                           # (C_out, Lt) f32

        # ---- residual branch (kept in f32, matching PyTorch) -----------------
        x_mid = slab[:, x_off:x_off + Lt]                  # (C_in, Lt) f32
        if has_downsample:
            res = jnp.dot(wd_ref[...], x_mid,
                          preferred_element_type=jnp.float32) + bd_ref[...]
        else:                                   # identity residual: VPU add
            res = x_mid

        o_ref[...] = (h2 + res).astype(o_ref.dtype)

    if has_downsample:
        def kernel(x_hbm, w1, b1, w2, b2, wd, bd, o, xbuf, sem):
            body(x_hbm, w1, b1, w2, b2, wd, bd, o, xbuf, sem)
    else:
        def kernel(x_hbm, w1, b1, w2, b2, o, xbuf, sem):
            body(x_hbm, w1, b1, w2, b2, None, None, o, xbuf, sem)
    return kernel


def tcn_block_forward(x, params, kernel_size, dilation):
    """x: (N, C_in, L) float32. Returns (N, C_out, L) float32."""
    N, C_in, L = x.shape
    C_out = params["w1"].shape[0]
    K = kernel_size
    assert (K - 1) * dilation % 2 == 0, (
        "(kernel_size-1)*dilation must be even so the module's symmetric "
        "padding preserves length (otherwise its own residual add fails).")
    pad = (K - 1) * dilation // 2

    has_downsample = params.get("wd") is not None
    if not has_downsample:
        assert C_in == C_out, "identity residual requires C_in == C_out"

    Lt = _choose_length_tile(L)
    n_lt = -(-L // Lt)                               # cdiv; tail tile clipped
    x_off = 0 if pad == 0 else _round_up(2 * pad, 128)   # 128-aligned DMA dst
    Lbuf = x_off + n_lt * Lt + 2 * pad               # scratch row incl. halos

    x = x.astype(jnp.float32)
    # (C_out, C_in, K) -> (C_out, K*C_in): column = tap*C + c, matching the
    # sublane order of the stacked tap operand built in the kernel.
    w1f = (jnp.transpose(params["w1"], (0, 2, 1))
           .reshape(C_out, K * C_in).astype(jnp.bfloat16))
    w2f = (jnp.transpose(params["w2"], (0, 2, 1))
           .reshape(C_out, K * C_out).astype(jnp.bfloat16))
    b1 = params["b1"].reshape(C_out, 1).astype(jnp.float32)
    b2 = params["b2"].reshape(C_out, 1).astype(jnp.float32)

    inputs = [x, w1f, b1, w2f, b2]
    in_specs = [
        pl.BlockSpec(memory_space=pl.ANY),   # x stays in HBM; manual row DMA
        pl.BlockSpec((C_out, K * C_in), lambda n, j: (0, 0)),
        pl.BlockSpec((C_out, 1), lambda n, j: (0, 0)),
        pl.BlockSpec((C_out, K * C_out), lambda n, j: (0, 0)),
        pl.BlockSpec((C_out, 1), lambda n, j: (0, 0)),
    ]
    if has_downsample:
        wd = params["wd"].astype(jnp.float32)        # f32 residual trunk
        bd = params["bd"].reshape(C_out, 1).astype(jnp.float32)
        inputs += [wd, bd]
        in_specs += [
            pl.BlockSpec((C_out, C_in), lambda n, j: (0, 0)),
            pl.BlockSpec((C_out, 1), lambda n, j: (0, 0)),
        ]

    kernel = _make_tcn_kernel(K, dilation, pad, L, Lt, C_in, C_out,
                              x_off, Lbuf, has_downsample)

    flops = 2 * N * L * C_out * (K * C_in + K * C_out
                                 + (C_in if has_downsample else 0))
    bytes_accessed = (4 * N * C_in * L + 4 * N * C_out * L
                      + 2 * int(w1f.size + w2f.size) + 8 * C_out
                      + (4 * (C_out * C_in + C_out) if has_downsample else 0))
    est_vmem = (4 * C_in * Lbuf + 8 * C_out * Lt
                + 4 * (K * (C_in + C_out) + 4 * C_out) * (Lt + 4 * pad)
                + 8 * K * C_out * (C_in + C_out))
    vmem_limit = int(min(max(32 * 1024 * 1024, 2 * est_vmem),
                         48 * 1024 * 1024))

    return pl.pallas_call(
        kernel,
        out_shape=jax.ShapeDtypeStruct((N, C_out, L), jnp.float32),
        grid=(N, n_lt),
        in_specs=in_specs,
        out_specs=pl.BlockSpec((None, C_out, Lt), lambda n, j: (n, 0, j)),
        scratch_shapes=[pltpu.VMEM((C_in, Lbuf), jnp.float32),
                        pltpu.SemaphoreType.DMA],
        compiler_params=pltpu.CompilerParams(
            # batch sharded across cores (megacore); L tiles run sequentially
            # per core so the per-batch staged x row stays valid.
            dimension_semantics=("parallel", "arbitrary"),
            vmem_limit_bytes=vmem_limit),
        cost_estimate=pl.CostEstimate(flops=int(flops), transcendentals=0,
                                      bytes_accessed=int(bytes_accessed)),
    )(*inputs)


def tcn_block_reference(x, params, kernel_size, dilation):
    """Plain-JAX f32 reference matching the PyTorch forward (eval dropout)."""
    pad = (kernel_size - 1) * dilation // 2

    def conv1d(inp, w, b, dil, padding):
        out = jax.lax.conv_general_dilated(
            inp, w, window_strides=(1,), padding=[(padding, padding)],
            rhs_dilation=(dil,), dimension_numbers=("NCH", "OIH", "NCH"))
        return out + b[None, :, None]

    h = jnp.maximum(conv1d(x, params["w1"], params["b1"], dilation, pad), 0.0)
    h = jnp.maximum(conv1d(h, params["w2"], params["b2"], dilation, pad), 0.0)
    if params.get("wd") is not None:
        res = conv1d(x, params["wd"][:, :, None], params["bd"], 1, 0)
    else:
        res = x
    return h + res


if __name__ == "__main__":
    key = jax.random.PRNGKey(0)

    configs = [
        # downsample residual; L = 2 x 1024-lane tiles (divisible path).
        dict(N=2, C_in=4, C_out=8, L=2048, K=3, dilation=2, downsample=True),
        # identity residual, K=5; L=96 < 128 -> single clipped tile.
        dict(N=2, C_in=8, C_out=8, L=96, K=5, dilation=1, downsample=False),
        # irregular L -> cdiv grid with masked/clipped tail tile; N=1.
        dict(N=1, C_in=8, C_out=16, L=700, K=3, dilation=4, downsample=True),
    ]

    for cfg in configs:
        key, k_x, k_w1, k_b1, k_w2, k_b2, k_wd, k_bd = jax.random.split(key, 8)
        N, C_in, C_out, L = cfg["N"], cfg["C_in"], cfg["C_out"], cfg["L"]
        K, dil = cfg["K"], cfg["dilation"]

        x = jax.random.normal(k_x, (N, C_in, L), dtype=jnp.float32)
        params = {
            "w1": 0.1 * jax.random.normal(k_w1, (C_out, C_in, K), jnp.float32),
            "b1": 0.1 * jax.random.normal(k_b1, (C_out,), jnp.float32),
            "w2": 0.1 * jax.random.normal(k_w2, (C_out, C_out, K), jnp.float32),
            "b2": 0.1 * jax.random.normal(k_b2, (C_out,), jnp.float32),
            "wd": (0.1 * jax.random.normal(k_wd, (C_out, C_in), jnp.float32)
                   if cfg["downsample"] else None),
            "bd": (0.1 * jax.random.normal(k_bd, (C_out,), jnp.float32)
                   if cfg["downsample"] else None),
        }

        out = jax.block_until_ready(tcn_block_forward(x, params, K, dil))
        ref = tcn_block_reference(x, params, K, dil)
        assert out.shape == (N, C_out, L), out.shape
        max_err = jnp.max(jnp.abs(out - ref))
        # conv path runs with bf16 MXU operands (f32 accumulation, f32
        # residual) -> loosened tolerance vs the pure-f32 reference.
        assert jnp.allclose(out, ref, atol=5e-2, rtol=5e-2), \
            f"max abs err {max_err}"

    print("KERNEL_OK")
</pallas_src>

<mosaic_0001>
module attributes {stable_mosaic.version = 11 : i64} {
  func.func @kernel(%arg0: i32, %arg1: i32, %arg2: memref<2x4x2048xf32, #tpu.memory_space<any>>, %arg3: memref<8x12xbf16, #tpu.memory_space<vmem>>, %arg4: memref<8x1xf32, #tpu.memory_space<vmem>>, %arg5: memref<8x24xbf16, #tpu.memory_space<vmem>>, %arg6: memref<8x1xf32, #tpu.memory_space<vmem>>, %arg7: memref<8x4xf32, #tpu.memory_space<vmem>>, %arg8: memref<8x1xf32, #tpu.memory_space<vmem>>, %arg9: memref<1x8x1024xf32, #tpu.memory_space<vmem>>, %arg10: memref<4x2180xf32, #tpu.memory_space<vmem>>, %arg11: memref<!tpu.dma_semaphore, #tpu.memory_space<semaphore_mem>>) attributes {dimension_semantics = [#tpu.dimension_semantics<parallel>, #tpu.dimension_semantics<arbitrary>], iteration_bounds = array<i64: 2, 2>, scalar_prefetch = 0 : i64, scratch_operands = 2 : i64, tpu.core_type = #tpu.core_type<tc>, window_params = [{}, {pipeline_mode = #tpu.pipeline_mode<synchronous>, transform_indices = @transform_1, window_bounds = array<i64: 8, 12>}, {pipeline_mode = #tpu.pipeline_mode<synchronous>, transform_indices = @transform_2, window_bounds = array<i64: 8, 1>}, {pipeline_mode = #tpu.pipeline_mode<synchronous>, transform_indices = @transform_3, window_bounds = array<i64: 8, 24>}, {pipeline_mode = #tpu.pipeline_mode<synchronous>, transform_indices = @transform_4, window_bounds = array<i64: 8, 1>}, {pipeline_mode = #tpu.pipeline_mode<synchronous>, transform_indices = @transform_5, window_bounds = array<i64: 8, 4>}, {pipeline_mode = #tpu.pipeline_mode<synchronous>, transform_indices = @transform_6, window_bounds = array<i64: 8, 1>}, {transform_indices = @transform_7, window_bounds = array<i64: 1, 8, 1024>}]} {
    %c0_i32 = arith.constant 0 : i32
    %0 = arith.cmpi eq, %arg1, %c0_i32 : i32
    %1 = arith.extui %0 : i1 to i32
    %c0_i32_0 = arith.constant 0 : i32
    %2 = arith.cmpi ne, %1, %c0_i32_0 : i32
    scf.if %2 {
      %cst_23 = arith.constant 0.000000e+00 : f32
      %55 = vector.broadcast %cst_23 : f32 to vector<4x128xf32>
      %c0_24 = arith.constant 0 : index
      %c0_25 = arith.constant 0 : index
      %56 = vector.load %arg10[%c0_24, %c0_25] : memref<4x2180xf32, #tpu.memory_space<vmem>>, vector<4x128xf32>
      tpu.vector_store %arg10[%c0_24, %c0_25], %55 {strides = array<i32>} : memref<4x2180xf32, #tpu.memory_space<vmem>>, vector<4x128xf32>,
      %cst_26 = arith.constant 0.000000e+00 : f32
      %57 = vector.broadcast %cst_26 : f32 to vector<4x4xf32>
      %c0_27 = arith.constant 0 : index
      %c2176 = arith.constant 2176 : index
      %58 = vector.load %arg10[%c0_27, %c2176] : memref<4x2180xf32, #tpu.memory_space<vmem>>, vector<4x4xf32>
      tpu.vector_store %arg10[%c0_27, %c2176], %57 {strides = array<i32>} : memref<4x2180xf32, #tpu.memory_space<vmem>>, vector<4x4xf32>,
      %c0_i32_28 = arith.constant 0 : i32
      %c0_i32_29 = arith.constant 0 : i32
      %59 = tpu.memref_slice %arg2[%arg0, %c0_i32_28, %c0_i32_29] : memref<2x4x2048xf32, #tpu.memory_space<any>> -> memref<1x4x2048xf32, #tpu.memory_space<any>>
      %60 = tpu.memref_squeeze %59 : memref<1x4x2048xf32, #tpu.memory_space<any>> -> memref<4x2048xf32, #tpu.memory_space<any>>
      %c0_i32_30 = arith.constant 0 : i32
      %c128_i32 = arith.constant 128 : i32
      %61 = tpu.memref_slice %arg10[%c0_i32_30, %c128_i32] : memref<4x2180xf32, #tpu.memory_space<vmem>> -> memref<4x2048xf32, #tpu.memory_space<vmem>>
      tpu.enqueue_dma source(%60 : memref<4x2048xf32, #tpu.memory_space<any>>) target(%61 : memref<4x2048xf32, #tpu.memory_space<vmem>>) target_semaphore(%arg11 : memref<!tpu.dma_semaphore, #tpu.memory_space<semaphore_mem>>)
      %c0_i32_31 = arith.constant 0 : i32
      %c0_i32_32 = arith.constant 0 : i32
      %62 = tpu.memref_slice %arg2[%arg0, %c0_i32_31, %c0_i32_32] : memref<2x4x2048xf32, #tpu.memory_space<any>> -> memref<1x4x2048xf32, #tpu.memory_space<any>>
      %63 = tpu.memref_squeeze %62 : memref<1x4x2048xf32, #tpu.memory_space<any>> -> memref<4x2048xf32, #tpu.memory_space<any>>
      %c0_i32_33 = arith.constant 0 : i32
      %c128_i32_34 = arith.constant 128 : i32
      %64 = tpu.memref_slice %arg10[%c0_i32_33, %c128_i32_34] : memref<4x2180xf32, #tpu.memory_space<vmem>> -> memref<4x2048xf32, #tpu.memory_space<vmem>>
      tpu.wait_dma2 semaphore(%arg11 : memref<!tpu.dma_semaphore, #tpu.memory_space<semaphore_mem>>) src(%63 : memref<4x2048xf32, #tpu.memory_space<any>>) dst(%64 : memref<4x2048xf32, #tpu.memory_space<vmem>>)
    } else {
    }
    %c1024_i32 = arith.constant 1024 : i32
    %3 = arith.muli %arg1, %c1024_i32 : i32
    %4 = tpu.assume_multiple %3, 128 : i32
    %c0 = arith.constant 0 : index
    %5 = arith.index_cast %4 : i32 to index
    %6 = vector.load %arg10[%c0, %5] : memref<4x2180xf32, #tpu.memory_space<vmem>>, vector<4x1156xf32>
    %7 = arith.truncf %6 : vector<4x1156xf32> to vector<4x1156xbf16>
    %8 = vector.extract_strided_slice %7 {offsets = [0, 124], sizes = [4, 1028], strides = [1, 1]} : vector<4x1156xbf16> to vector<4x1028xbf16>
    %9 = vector.extract_strided_slice %7 {offsets = [0, 126], sizes = [4, 1028], strides = [1, 1]} : vector<4x1156xbf16> to vector<4x1028xbf16>
    %10 = vector.extract_strided_slice %7 {offsets = [0, 128], sizes = [4, 1028], strides = [1, 1]} : vector<4x1156xbf16> to vector<4x1028xbf16>
    %11 = tpu.concatenate %8, %9, %10 in 0 : vector<4x1028xbf16>, vector<4x1028xbf16>, vector<4x1028xbf16> -> vector<12x1028xbf16>
    %c0_1 = arith.constant 0 : index
    %c0_2 = arith.constant 0 : index
    %12 = vector.load %arg3[%c0_1, %c0_2] : memref<8x12xbf16, #tpu.memory_space<vmem>>, vector<8x12xbf16>
    %cst = arith.constant dense<0.000000e+00> : vector<8x1028xf32>
    %13 = tpu.matmul %12, %11, %cst {dimension_numbers = #tpu.dot_dimension_numbers<[1], [0], [0], [1], [0, 0, 1, 1], [], []>} : vector<8x12xbf16>, vector<12x1028xbf16>, vector<8x1028xf32> -> vector<8x1028xf32>
    %c0_3 = arith.constant 0 : index
    %c0_4 = arith.constant 0 : index
    %14 = vector.load %arg4[%c0_3, %c0_4] : memref<8x1xf32, #tpu.memory_space<vmem>>, vector<8x1xf32>
    %15 = vector.broadcast %14 : vector<8x1xf32> to vector<8x1028xf32>
    %16 = arith.addf %13, %15 : vector<8x1028xf32>
    %cst_5 = arith.constant 0.000000e+00 : f32
    %17 = vector.broadcast %cst_5 : f32 to vector<8x1028xf32>
    %18 = arith.maximumf %16, %17 : vector<8x1028xf32>
    %c1024_i32_6 = arith.constant 1024 : i32
    %19 = arith.muli %arg1, %c1024_i32_6 : i32
    %c2_i32 = arith.constant 2 : i32
    %20 = arith.subi %19, %c2_i32 : i32
    %21 = tpu.iota {dimensions = array<i32: 1>} : vector<1x1028xi32>
    %22 = vector.broadcast %20 : i32 to vector<1x1028xi32>
    %23 = arith.addi %22, %21 : vector<1x1028xi32>
    %c0_i32_7 = arith.constant 0 : i32
    %24 = vector.broadcast %c0_i32_7 : i32 to vector<1x1028xi32>
    %25 = arith.cmpi sge, %23, %24 : vector<1x1028xi32>
    %c2048_i32 = arith.constant 2048 : i32
    %26 = vector.broadcast %c2048_i32 : i32 to vector<1x1028xi32>
    %27 = arith.cmpi slt, %23, %26 : vector<1x1028xi32>
    %28 = arith.andi %25, %27 : vector<1x1028xi1>
    %cst_8 = arith.constant 0.000000e+00 : f32
    %29 = vector.shape_cast %28 : vector<1x1028xi1> to vector<1x1028xi1>
    %30 = vector.broadcast %29 : vector<1x1028xi1> to vector<8x1028xi1>
    %31 = vector.broadcast %cst_8 : f32 to vector<8x1028xf32>
    %32 = arith.select %30, %18, %31 : vector<8x1028xi1>, vector<8x1028xf32>
    %33 = arith.truncf %32 : vector<8x1028xf32> to vector<8x1028xbf16>
    %34 = vector.extract_strided_slice %33 {offsets = [0, 0], sizes = [8, 1024], strides = [1, 1]} : vector<8x1028xbf16> to vector<8x1024xbf16>
    %35 = vector.extract_strided_slice %33 {offsets = [0, 2], sizes = [8, 1024], strides = [1, 1]} : vector<8x1028xbf16> to vector<8x1024xbf16>
    %36 = vector.extract_strided_slice %33 {offsets = [0, 4], sizes = [8, 1024], strides = [1, 1]} : vector<8x1028xbf16> to vector<8x1024xbf16>
    %37 = tpu.concatenate %34, %35, %36 in 0 : vector<8x1024xbf16>, vector<8x1024xbf16>, vector<8x1024xbf16> -> vector<24x1024xbf16>
    %c0_9 = arith.constant 0 : index
    %c0_10 = arith.constant 0 : index
    %38 = vector.load %arg5[%c0_9, %c0_10] : memref<8x24xbf16, #tpu.memory_space<vmem>>, vector<8x24xbf16>
    %cst_11 = arith.constant dense<0.000000e+00> : vector<8x1024xf32>
    %39 = tpu.matmul %38, %37, %cst_11 {dimension_numbers = #tpu.dot_dimension_numbers<[1], [0], [0], [1], [0, 0, 1, 1], [], []>} : vector<8x24xbf16>, vector<24x1024xbf16>, vector<8x1024xf32> -> vector<8x1024xf32>
    %c0_12 = arith.constant 0 : index
    %c0_13 = arith.constant 0 : index
    %40 = vector.load %arg6[%c0_12, %c0_13] : memref<8x1xf32, #tpu.memory_space<vmem>>, vector<8x1xf32>
    %41 = vector.broadcast %40 : vector<8x1xf32> to vector<8x1024xf32>
    %42 = arith.addf %39, %41 : vector<8x1024xf32>
    %cst_14 = arith.constant 0.000000e+00 : f32
    %43 = vector.broadcast %cst_14 : f32 to vector<8x1024xf32>
    %44 = arith.maximumf %42, %43 : vector<8x1024xf32>
    %45 = vector.extract_strided_slice %6 {offsets = [0, 128], sizes = [4, 1024], strides = [1, 1]} : vector<4x1156xf32> to vector<4x1024xf32>
    %c0_15 = arith.constant 0 : index
    %c0_16 = arith.constant 0 : index
    %46 = vector.load %arg7[%c0_15, %c0_16] : memref<8x4xf32, #tpu.memory_space<vmem>>, vector<8x4xf32>
    %cst_17 = arith.constant dense<0.000000e+00> : vector<8x1024xf32>
    %47 = tpu.matmul %46, %45, %cst_17 {dimension_numbers = #tpu.dot_dimension_numbers<[1], [0], [0], [1], [0, 0, 1, 1], [], []>} : vector<8x4xf32>, vector<4x1024xf32>, vector<8x1024xf32> -> vector<8x1024xf32>
    %c0_18 = arith.constant 0 : index
    %c0_19 = arith.constant 0 : index
    %48 = vector.load %arg8[%c0_18, %c0_19] : memref<8x1xf32, #tpu.memory_space<vmem>>, vector<8x1xf32>
    %49 = vector.broadcast %48 : vector<8x1xf32> to vector<8x1024xf32>
    %50 = arith.addf %47, %49 : vector<8x1024xf32>
    %51 = arith.addf %44, %50 : vector<8x1024xf32>
    %c0_20 = arith.constant 0 : index
    %c0_21 = arith.constant 0 : index
    %c0_22 = arith.constant 0 : index
    %52 = vector.load %arg9[%c0_20, %c0_21, %c0_22] : memref<1x8x1024xf32, #tpu.memory_space<vmem>>, vector<1x8x1024xf32>
    %53 = vector.shape_cast %52 : vector<1x8x1024xf32> to vector<8x1024xf32>
    %54 = vector.shape_cast %51 : vector<8x1024xf32> to vector<1x8x1024xf32>
    tpu.vector_store %arg9[%c0_20, %c0_21, %c0_22], %54 {strides = array<i32>} : memref<1x8x1024xf32, #tpu.memory_space<vmem>>, vector<1x8x1024xf32>,
    return
  }
  func.func @transform_1(%arg0: i32, %arg1: i32) -> (i32, i32) {
    %c0_i32 = arith.constant 0 : i32
    %c0_i32_0 = arith.constant 0 : i32
    %c0_i32_1 = arith.constant 0 : i32
    return %c0_i32, %c0_i32_0 : i32, i32
  }
  func.func @transform_2(%arg0: i32, %arg1: i32) -> (i32, i32) {
    %c0_i32 = arith.constant 0 : i32
    %c0_i32_0 = arith.constant 0 : i32
    %c0_i32_1 = arith.constant 0 : i32
    return %c0_i32, %c0_i32_0 : i32, i32
  }
  func.func @transform_3(%arg0: i32, %arg1: i32) -> (i32, i32) {
    %c0_i32 = arith.constant 0 : i32
    %c0_i32_0 = arith.constant 0 : i32
    %c0_i32_1 = arith.constant 0 : i32
    return %c0_i32, %c0_i32_0 : i32, i32
  }
  func.func @transform_4(%arg0: i32, %arg1: i32) -> (i32, i32) {
    %c0_i32 = arith.constant 0 : i32
    %c0_i32_0 = arith.constant 0 : i32
    %c0_i32_1 = arith.constant 0 : i32
    return %c0_i32, %c0_i32_0 : i32, i32
  }
  func.func @transform_5(%arg0: i32, %arg1: i32) -> (i32, i32) {
    %c0_i32 = arith.constant 0 : i32
    %c0_i32_0 = arith.constant 0 : i32
    %c0_i32_1 = arith.constant 0 : i32
    return %c0_i32, %c0_i32_0 : i32, i32
  }
  func.func @transform_6(%arg0: i32, %arg1: i32) -> (i32, i32) {
    %c0_i32 = arith.constant 0 : i32
    %c0_i32_0 = arith.constant 0 : i32
    %c0_i32_1 = arith.constant 0 : i32
    return %c0_i32, %c0_i32_0 : i32, i32
  }
  func.func @transform_7(%arg0: i32, %arg1: i32) -> (i32, i32, i32) {
    %c0_i32 = arith.constant 0 : i32
    %c0_i32_0 = arith.constant 0 : i32
    return %arg0, %c0_i32, %arg1 : i32, i32, i32
  }
}

</mosaic_0001>

<bundles_post_ra>
// kernel: tpu_custom_call.1
= control target key start
LH: loop header
LB: loop body
LE: loop exit
PB: predicated region body
PF: predicated region fallthrough
CT: control target
= control target key end

     0   :  { %12 = vsyncpa [#allocation5], 0  ;;  %s2365_s0 = inlined_call_operand.hbm [shape: f32[2,4,2048], index: 0, kind: input, shape index: {}]   ;;  %s2366_s1 = inlined_call_operand.vmem [shape: bf16[8,12], index: 1, kind: input, shape index: {}]   ;;  %s2367_s2 = inlined_call_operand.vmem [shape: f32[8,1], index: 2, kind: input, shape index: {}]   ;;  %s2368_s3 = inlined_call_operand.vmem [shape: bf16[8,24], index: 3, kind: input, shape index: {}]   ;;  %s2369_s4 = inlined_call_operand.vmem [shape: f32[8,1], index: 4, kind: input, shape index: {}]   ;;  %s2370_s5 = inlined_call_operand.vmem [shape: f32[8,4], index: 5, kind: input, shape index: {}]   ;;  %s2371_s6 = inlined_call_operand.vmem [shape: f32[8,1], index: 6, kind: input, shape index: {}]   ;;  %s2372_s7 = inlined_call_operand.hbm [shape: f32[2,8,2048], index: 7, kind: output, shape index: {}]  }
   0x1   :  { %14 = vsyncpa [#allocation5 + $0x1], 0  ;;  %s1851_s24 = smov 0   ;;  %s1853_s25 = smov 0  }
   0x2   :  { %s1855_s26 = smov 0   ;;  %s1857_s27 = smov 0  }
   0x3   :  { %s1859_s28 = smov 0   ;;  %s1861_s29 = smov 0  }
   0x4   :  { %s1863_s30 = smov 0   ;;  %s1865_s8 = smov 0  }
   0x5 LB: > { %2377 = sst [smem:[#allocation12_spill]] %s1795_s30  ;;  %s1537_s9 = sadd.s32 4294967295, %s1799_s8   ;;  %s1799_s8 = sphi %s1865_s8, %s20_s8   ;;  %s1795_s30 = sphi %s1863_s30, %s2387_s30   ;;  %s1791_s29 = sphi %s1861_s29, %s2392_s29   ;;  %s1787_s28 = sphi %s1859_s28, %s2385_s28   ;;  %s1783_s27 = sphi %s1857_s27, %s2391_s27   ;;  %s1779_s26 = sphi %s1855_s26, %s2390_s26   ;;  %s1775_s25 = sphi %s1853_s25, %s2389_s25   ;;  %s1771_s24 = sphi %s1851_s24, %s2388_s24  }
   0x6   : > { %s1538_s10 = sadd.s32 4294967294, %s1799_s8   ;;  %s29_s11 = sadd.s32 1, %s1791_s29 }
   0x7   : > { %p30_p0 = scmp.ge.s32.totalorder %s29_s11, 2  ;;  %s32_s12 = sadd.s32 1, %s1795_s30 }
   0x8   : > { %p177_p1 = scmp.ne.s32.totalorder %s1779_s26, %s1775_s25  ;;  %p178_p2 = scmp.eq.s32.totalorder %s1537_s9, 3 }
   0x9   : > { %s2394_s11 = smov (%p30_p0, %s29_s11), 0  ;;  %s2396_s12 = smov (!%p30_p0, %s32_s12), %s1795_s30 }
   0xa   : > { %2378 = sst [smem:[#allocation13_spill]] %s2394_s11  ;;  %s163_s13 = ssub.s32 %s1791_s29, %s2394_s11 }
   0xb   : > { %p1902_p3 = por %p178_p2, %p177_p1  ;;  %p34_p4 = scmp.ge.s32.totalorder %s2396_s12, 2 }
   0xc   : > { %p183_p5 = scmp.ne.s32.totalorder %s1775_s25, %s1771_s24  ;;  %p184_p6 = scmp.eq.s32.totalorder %s1538_s10, 3 }
   0xd   : > { %p1540_p7 = scmp.ge.s32.totalorder %s1799_s8, 1  ;;  %s2398_s12 = smov (%p34_p4, %s2396_s12), 0 }
   0xe   : > { %2380 = sst [smem:[#allocation14_spill]] %s2398_s12  ;;  %p1911_p8 = por %p184_p6, %p183_p5 }
   0xf   : > { %p220_p9 = scmp.lt.s32.totalorder %s1799_s8, 5  ;;  %s162_s16 = ssub.s32 %s1795_s30, %s2398_s12 }
  0x10   : > { %s167_s17 = sadd.s32 1, %s1779_s26  ;;  %s164_s18 = sor.u32 %s163_s13, %s162_s16 }
  0x11   : > { %p221_p10 = pnand %p1540_p7, %p220_p9  ;;  %p165_p11 = scmp.eq.s32.totalorder %s164_s18, 0 }
  0x12   : > { %s2373_s20 = sand.u32 (!%p221_p10), 1, %s1775_s25   ;;  %p1542_p12 = scmp.ne.s32.totalorder (!%p221_p10), %s1783_s27, 0 }
  0x13   : > { %s1920_s19 = scalar_select %p165_p11, %s1779_s26, %s167_s17  }
  0x14   : > { %224 = sbr.rel (%p221_p10) target bundleno = 930 (0x3a2), region = 44  ;;  %s1541_s21 = sshll.u32 (!%p221_p10), %s2373_s20, 6 }
  0x15   : > { %s1925_s22 = scalar_lea.vmem (!%p221_p10), [#allocation4], %s1541_s21 }
  0x1b   : > { %250 = sbr.rel (%p1542_p12) target bundleno = 53 (0x35), region = 48  ;;  %vm252_vm0 = vcmask (!%p1542_p12), 27648   ;;  %s1584_s23 = sshll.u32 (!%p1542_p12), %s1787_s28, 10  ;;  %v1801_v0 = vmov (!%p1542_p12), 0.0  }
  0x1c   : > { %251 = vst [vmem:[#allocation2] sm:$0xf] (!%p1542_p12), %v1801_v0  ;;  %253 = vst.msk [vmem:[#allocation2 + $0x44] sm:$0xf] (!%p1542_p12), %vm252_vm0, %v1801_v0  ;;  %s256_s13 = scalar_lea.hbm (!%p1542_p12), %s2365_s0, %s1584_s23  ;;  %s1802_s16 = smov (!%p1542_p12), [#allocation2 + $0x4]  }
  0x1d   : > { %s265_s17 = sshll.u32 (!%p1542_p12), %s1802_s16, 4  ;;  %s1679_s18 = scalar_lea.hbm (!%p1542_p12), %s256_s13, 1024  ;;  %s266_s17 = int_to_ptr.vmem [resolvable:$true] %s265_s17 }
  0x1e   : > { %p1680_p13 = scmp.ne.s32.totalorder (!%p1542_p12), %s256_s13, %s1679_s18  ;;  %s1681_s12 = scalar_lea.hbm (!%p1542_p12), %s2365_s0, 2048 }
  0x1f   : > { %p1682_p0 = scmp.lt.u32.totalorder (!%p1542_p12), %s256_s13, %s2365_s0  ;;  %p1683_p1 = scmp.lt.u32.totalorder (!%p1542_p12), %s1681_s12, %s1679_s18 }
  0x20   : > { %p1685_p4 = scmp.lt.u32.totalorder (!%p1542_p12), %s1679_s18, %s256_s13 }
  0x21   : > { %p1684_p2 = por (!%p1542_p12), %p1683_p1, %p1682_p0 }
  0x23   : > { %p1686_p5 = por %p1685_p4, %p1684_p2 }
  0x25   : > { %p1687_p6 = pnand %p1686_p5, %p1680_p13 }
  0x27   : > { %1690 = shalt.err (!%p1687_p6)  }
  0x28   : > { %s1691_s23 = scalar_lea.vmem %s266_s17, 1024  ;;  %s1803_s9 = smov [#allocation2]  }
  0x29   : > { %p1692_p7 = scmp.ne.s32.totalorder %s266_s17, %s1691_s23  ;;  %s1693_s10 = sshll.u32 %s1803_s9, 4  ;;  %s1694_s10 = int_to_ptr.vmem [resolvable:$false] %s1693_s10 }
  0x2a   : > { %s1695_s16 = scalar_lea.vmem %s1694_s10, 1152  ;;  %p1696_p9 = scmp.lt.s32.totalorder %s266_s17, %s1694_s10 }
  0x2b   : > { %p1697_p10 = scmp.lt.s32.totalorder %s1695_s16, %s1691_s23 }
  0x2d   : > { %p1698_p11 = por %p1697_p10, %p1696_p9 }
  0x2f   : > { %p1699_p12 = pnand %p1698_p11, %p1692_p7 }
  0x31   : > { %1702 = shalt.err (!%p1699_p12)  }
  0x32   : > { %268 = dma.hbm_to_vmem [thread:$0]  %s256_s13, 1024, %s266_s17, [#allocation3] }
  0x33   : > { %1763 = dma.done.wait [#allocation3], 1024 }
  0x34   : > { %1764 = vsyncadd [#allocation3], 4294966272 }
  0x35 PF: > { %s1545_s30 = sshll.u32 %s1783_s27, 10  ;;  %s1804_s13 = smov 126   ;;  %vm348_vm1 = vcmask 1031168   ;;  %vm385_vm2 = vcmask 1014784   ;;  %vm422_vm3 = vcmask 1043456   ;;  %v1806_v48 = vmov 0  }
  0x36   : > { %s274_s11 = sshra.s32 %s1545_s30, 7  ;;  %s1805_s17 = smov 124   ;;  %548 = vmatprep.mubr.bf16.mxu0 %v1806_v48  ;;  %589 = vmatprep.mubr.bf16.mxu1 %v1806_v48  ;;  %vm394_vm4 = vcmask 1041408   ;;  %vm475_vm5 = vcmask 31744   ;;  %vm488_vm6 = vcmask 1045504   ;;  %vm484_vm7 = vcmask 97280  }
  0x37   : > { %s1546_s12 = sshll.u32 %s274_s11, 2  ;;  %1672 = vset.pattern.permute.xlu0 %v1806_v48  ;;  %1673 = vset.pattern.permute.xlu1 %v1806_v48  ;;  %s1807_s18 = smov 4   ;;  %vm1809_vm8 = vmmov 0  }
  0x38   : > { %s1941_s20 = scalar_lea.vmem [#allocation2], %s1546_s12  ;;  %s1556_s16 = sadd.s32 4294967294, %s1545_s30 }
  0x39   : > { %v1944_v1 = vld [vmem:[%s1941_s20 + $0x8] sm:$0xff]  ;;  %v278_v2 = vld [vmem:[%s1941_s20] sm:$0xff]  ;;  %v1948_v3 = vld [vmem:[%s1941_s20 + $0x10] sm:$0xff]  ;;  %s1578_s23 = sshll.u32 %s1783_s27, 3  ;;  %s1579_s9 = sshll.u32 %s1787_s28, 4 }
  0x3a   : > { %v1952_v4 = vpack.c.bf16 %v1944_v1, %v1944_v1  ;;  %v1954_v5 = vpack.c.bf16 %v278_v2, %v278_v2  ;;  %v1956_v6 = vcombine.high %v278_v2, %v278_v2  ;;  %v1960_v7 = vcombine.high %v1944_v1, %v1944_v1  ;;  %v1997_v21 = vld [vmem:[%s1941_s20 + $0x18] sm:$0xff]  ;;  %v2008_v25 = vld [vmem:[%s1941_s20 + $0x20] sm:$0xff]  ;;  %s1462_s10 = sadd.s32 %s1579_s9, %s1578_s23  ;;  %s1466_s28 = sshll.u32 %s1925_s22, 4  ;;  %s2308_s28 = int_to_ptr.vmem [resolvable:$true] %s1466_s28 }
  0x3b   : > { %v1964_v8 = vpack.c.bf16 %v1948_v3, %v1948_v3  ;;  %v1968_v9 = vcombine.high %v1948_v3, %v1948_v3  ;;  %v2005_v24 = vpack.c.bf16 %v1997_v21, %v1997_v21  ;;  %v2012_v26 = vcombine.high %v1997_v21, %v1997_v21  ;;  %s1580_s27 = sshll.u32 %s1462_s10, 7  ;;  %s2384_s12 = sand.u32 1, %s1775_s25  }
  0x3c   : > { %v320_v10 = vrot.slane %v1952_v4, 6  ;;  %v318_v11 = vrot.slane %v1954_v5, 6  ;;  %v1974_v12 = vpack.c.bf16 %v1960_v7, %v1960_v7  ;;  %v1980_v13 = vpack.c.bf16 %v1956_v6, %v1956_v6  ;;  %s2306_s11 = scalar_lea.hbm %s2372_s7, %s1580_s27  ;;  %s1450_s20 = scalar_lea.sflag [#allocation5], %s2384_s12 }
  0x3d   : > { %v322_v15 = vrot.slane %v1964_v8, 6  ;;  %v1986_v16 = vpack.c.bf16 %v1968_v9, %v1968_v9  ;;  %v359_v19 = vrot.slane %v1952_v4, 4  ;;  %v361_v22 = vrot.slane %v1964_v8, 4 }
  0x3e   : > { %332 = vrot.lane.b32.xlu1 %v320_v10, %s1804_s13  ;;  %328 = vrot.lane.b32.xlu0 %v318_v11, %s1804_s13  ;;  %v321_v14 = vrot.slane %v1974_v12, 6  ;;  %v319_v18 = vrot.slane %v1980_v13, 6  ;;  %v358_v20 = vrot.slane %v1980_v13, 4  ;;  %v360_v23 = vrot.slane %v1974_v12, 4 }
  0x3f   : > { %v323_v17 = vrot.slane %v1986_v16, 6  ;;  %v2016_v27 = vpack.c.bf16 %v2008_v25, %v2008_v25  ;;  %v324_v28 = vrot.slane %v2005_v24, 6  ;;  %v362_v29 = vrot.slane %v1986_v16, 4 }
  0x40   : > { %v2024_v30 = vpack.c.bf16 %v2012_v26, %v2012_v26  ;;  %v292_v31 = vcombine.high %v2008_v25, %v2008_v25  ;;  %v363_v35 = vrot.slane %v2005_v24, 4 }
  0x41   : > { %v326_v32 = vrot.slane %v2016_v27, 6  ;;  %v365_v37 = vrot.slane %v2016_v27, 4 }
  0x42   : > { %334 = vrot.lane.b32.xlu1 %v321_v14, %s1804_s13  ;;  %336 = vrot.lane.b32.xlu0 %v322_v15, %s1804_s13  ;;  %v325_v33 = vrot.slane %v2024_v30, 6  ;;  %v307_v34 = vpack.c.bf16 %v292_v31, %v292_v31  ;;  %v364_v38 = vrot.slane %v2024_v30, 4 }
  0x44   : > { %v327_v36 = vrot.slane %v307_v34, 6  ;;  %v366_v39 = vrot.slane %v307_v34, 4 }
  0x46   : > { %338 = vrot.lane.b32.xlu1 %v323_v17, %s1804_s13  ;;  %330 = vrot.lane.b32.xlu0 %v319_v18, %s1804_s13 }
  0x4a   : > { %369 = vrot.lane.b32.xlu1 %v359_v19, %s1805_s17  ;;  %367 = vrot.lane.b32.xlu0 %v358_v20, %s1805_s17 }
  0x4e   : > { %373 = vrot.lane.b32.xlu1 %v361_v22, %s1805_s17  ;;  %371 = vrot.lane.b32.xlu0 %v360_v23, %s1805_s17 }
  0x52   : > { %340 = vrot.lane.b32.xlu1 %v324_v28, %s1804_s13  ;;  %375 = vrot.lane.b32.xlu0 %v362_v29, %s1805_s17 }
  0x56   : > { %344 = vrot.lane.b32.xlu1 %v326_v32, %s1804_s13  ;;  %342 = vrot.lane.b32.xlu0 %v325_v33, %s1804_s13 }
  0x5a   : > { %377 = vrot.lane.b32.xlu1 %v363_v35, %s1805_s17  ;;  %346 = vrot.lane.b32.xlu0 %v327_v36, %s1804_s13 }
  0x5e   : > { %381 = vrot.lane.b32.xlu1 %v365_v37, %s1805_s17  ;;  %379 = vrot.lane.b32.xlu0 %v364_v38, %s1805_s17 }
  0x62   : > { %383 = vrot.lane.b32.xlu0 %v366_v39, %s1805_s17  ;;  %v442_v39 = vld [vmem:[%s2367_s2] sm:$0xff] }
  0xb0   : > { %v333_v40 = vpop.permute.xlu1 %332  ;;  %v329_v41 = vpop.permute.xlu0 %328 }
  0xb4   : > { %v335_v42 = vpop.permute.xlu1 %334  ;;  %v337_v43 = vpop.permute.xlu0 %336 }
  0xb5   : > { %v351_v55 = vsel %vm348_vm1, %v333_v40, %v335_v42  ;;  %v352_v56 = vsel %vm348_vm1, %v335_v42, %v337_v43 }
  0xb6   : > { %v406_v62 = vsel %vm394_vm4, %v1974_v12, %v352_v56  ;;  %v403_v63 = vsel %vm394_vm4, %v1952_v4, %v351_v55 }
  0xb8   : > { %v339_v44 = vpop.permute.xlu1 %338  ;;  %v331_v45 = vpop.permute.xlu0 %330 }
  0xb9   : > { %v349_v46 = vsel %vm348_vm1, %v329_v41, %v331_v45  ;;  %v350_v47 = vsel %vm348_vm1, %v331_v45, %v333_v40  ;;  %v353_v0 = vsel %vm348_vm1, %v337_v43, %v339_v44 }
  0xba   : > { %v397_v51 = vsel %vm394_vm4, %v1954_v5, %v349_v46  ;;  %v400_v54 = vsel %vm394_vm4, %v1980_v13, %v350_v47  ;;  %v409_v12 = vsel %vm394_vm4, %v1964_v8, %v353_v0 }
  0xbc   : > { %v370_v49 = vpop.permute.xlu1 %369  ;;  %v368_v50 = vpop.permute.xlu0 %367 }
  0xbd   : > { %v386_v52 = vsel %vm385_vm2, %v368_v50, %v370_v49  ;;  %v424_v53 = vsel %vm422_vm3, %v397_v51, %v368_v50 }
  0xbe   : > { %457 = vrot.lane.b32.xlu1 %v424_v53, %s1807_s18  ;;  %v426_v57 = vsel %vm422_vm3, %v400_v54, %v386_v52 }
  0xbf   : > { %459 = vrot.lane.b32.xlu0 %v426_v57, %s1807_s18 }
  0xc0   : > { %v374_v58 = vpop.permute.xlu1 %373  ;;  %v372_v59 = vpop.permute.xlu0 %371 }
  0xc1   : > { %v387_v60 = vsel %vm385_vm2, %v370_v49, %v372_v59  ;;  %v388_v61 = vsel %vm385_vm2, %v372_v59, %v374_v58 }
  0xc2   : > { %v430_v2 = vsel %vm422_vm3, %v406_v62, %v388_v61  ;;  %v428_v5 = vsel %vm422_vm3, %v403_v63, %v387_v60  ;;  %v1808_v61 = vmov 0.0  }
  0xc3   : > { %463 = vrot.lane.b32.xlu0 %v430_v2, %s1807_s18  ;;  %461 = vrot.lane.b32.xlu1 %v428_v5, %s1807_s18  ;;  %v730_v2 = vlaneseq }
  0xc4   : > { %v341_v10 = vpop.permute.xlu1 %340  ;;  %v376_v11 = vpop.permute.xlu0 %375 }
  0xc5   : > { %v389_v13 = vsel %vm385_vm2, %v374_v58, %v376_v11  ;;  %v354_v17 = vsel %vm348_vm1, %v339_v44, %v341_v10  ;;  %v731_v5 = vand.u32 127, %v730_v2 }
  0xc6   : > { %v432_v14 = vsel %vm422_vm3, %v409_v12, %v389_v13  ;;  %v412_v22 = vsel %vm394_vm4, %v1986_v16, %v354_v17 }
  0xc7   : > { %465 = vrot.lane.b32.xlu1 %v432_v14, %s1807_s18  ;;  %v733_v13 = vadd.s32 256, %v731_v5 }
  0xc8   : > { %v345_v4 = vpop.permute.xlu1 %344  ;;  %v343_v15 = vpop.permute.xlu0 %342 }
  0xc9   : > { %v355_v23 = vsel %vm348_vm1, %v341_v10, %v343_v15  ;;  %v356_v28 = vsel %vm348_vm1, %v343_v15, %v345_v4  ;;  %v2135_v10 = vstv %s1556_s16 }
  0xca   : > { %v418_v34 = vsel %vm394_vm4, %v2024_v30, %v356_v28  ;;  %v415_v16 = vsel %vm394_vm4, %v2005_v24, %v355_v23  ;;  %v741_v12 = vadd.s32 %v2135_v10, %v731_v5  ;;  %v743_v17 = vadd.s32 %v2135_v10, %v733_v13 }
  0xcc   : > { %v378_v18 = vpop.permute.xlu1 %377  ;;  %v347_v19 = vpop.permute.xlu0 %346  ;;  %vm750_vm9 = vcmp.ge.s32.totalorder %v741_v12, 0  ;;  %vm759_vm10 = vcmp.lt.s32.totalorder %v741_v12, 2048  ;;  %vm752_vm15 = vcmp.ge.s32.totalorder %v743_v17, 0  ;;  %vm761_vm0 = vcmp.lt.s32.totalorder %v743_v17, 2048 }
  0xcd   : > { %v390_v20 = vsel %vm385_vm2, %v376_v11, %v378_v18  ;;  %v357_v35 = vsel %vm348_vm1, %v345_v4, %v347_v19  ;;  %v732_v11 = vadd.s32 128, %v731_v5  ;;  %v734_v4 = vadd.s32 384, %v731_v5  ;;  %vm768_vm13 = vmand %vm750_vm9, %vm759_vm10 }
  0xce   : > { %v434_v8 = vsel %vm422_vm3, %v412_v22, %v390_v20  ;;  %v421_v24 = vsel %vm394_vm4, %v2016_v27, %v357_v35  ;;  %v441_v27 = vld [vmem:[%s2366_s1] sm:$0xf] }
  0xcf   : > { %467 = vrot.lane.b32.xlu0 %v434_v8, %s1807_s18  ;;  %v742_v14 = vadd.s32 %v2135_v10, %v732_v11  ;;  %v744_v19 = vadd.s32 %v2135_v10, %v734_v4 }
  0xd0   : > { %v382_v29 = vpop.permute.xlu1 %381  ;;  %v380_v31 = vpop.permute.xlu0 %379 }
  0xd1   : > { %v391_v32 = vsel %vm385_vm2, %v378_v18, %v380_v31  ;;  %v392_v33 = vsel %vm385_vm2, %v380_v31, %v382_v29  ;;  %vm751_vm11 = vcmp.ge.s32.totalorder %v742_v14, 0  ;;  %vm760_vm12 = vcmp.lt.s32.totalorder %v742_v14, 2048 }
  0xd2   : > { %v438_v36 = vsel %vm422_vm3, %v418_v34, %v392_v33  ;;  %v436_v37 = vsel %vm422_vm3, %v415_v16, %v391_v32  ;;  %vm769_vm14 = vmand %vm751_vm11, %vm760_vm12  ;;  %vm753_vm4 = vcmp.ge.s32.totalorder %v744_v19, 0 }
  0xd3   : > { %471 = vrot.lane.b32.xlu0 %v438_v36, %s1807_s18  ;;  %469 = vrot.lane.b32.xlu1 %v436_v37, %s1807_s18 }
  0xd4   : > { %v384_v38 = vpop.permute.xlu0 %383 }
  0xd5   : > { %v393_v30 = vsel %vm385_vm2, %v382_v29, %v384_v38 }
  0xd6   : > { %v440_v40 = vsel %vm422_vm3, %v421_v24, %v393_v30 }
  0xd7   : > { %473 = vrot.lane.b32.xlu1 %v440_v40, %s1807_s18  ;;  %445 = vperm.xlu0 %1672, %v442_v39   ;;  %v735_v40 = vadd.s32 512, %v731_v5 }
 0x130   : > { %v458_v41 = vpop.permute.xlu1 %457 }
 0x131   : > { %v460_v42 = vpop.permute.xlu0 %459 }
 0x132   : > { %v476_v43 = vsel %vm475_vm5, %v458_v41, %v460_v42 }
 0x133   : > { %v490_v47 = vsel %vm488_vm6, %v476_v43, 0 }
 0x135   : > { %v462_v44 = vpop.permute.xlu1 %461  ;;  %v464_v45 = vpop.permute.xlu0 %463 }
 0x136   : > { %v477_v46 = vsel %vm475_vm5, %v460_v42, %v462_v44  ;;  %v478_v49 = vsel %vm475_vm5, %v462_v44, %v464_v45  ;;  %v736_v42 = vadd.s32 640, %v731_v5 }
 0x137   : > { %1547 = vmatprep.subr.msk.bf16.mxu0 %vm488_vm6, %v477_v46  ;;  %v496_v52 = vsel %vm488_vm6, %v478_v49, 0  ;;  %v737_v46 = vadd.s32 768, %v731_v5 }
 0x138   : > { %517 = vmatpush1.bf16.msra.mxu0 %v490_v47  ;;  %v746_v49 = vadd.s32 %v2135_v10, %v736_v42 }
 0x139   : > { %v466_v50 = vpop.permute.xlu1 %465 }
 0x13a   : > { %v479_v51 = vsel %vm475_vm5, %v464_v45, %v466_v50  ;;  %vm755_vm11 = vcmp.ge.s32.totalorder %v746_v49, 0  ;;  %vm764_vm12 = vcmp.lt.s32.totalorder %v746_v49, 2048 }
 0x13b   : > { %1548 = vmatmul.mubr.msk.bf16.vlgmr.msra.gmra.mrb[0].mxu0 %vm484_vm7, %v441_v27  ;;  %1549 = vmatprep.subr.msk.bf16.mxu1 %vm488_vm6, %v479_v51 }
 0x13c   : > { %558 = vmatpush1.bf16.msra.mxu1 %v496_v52  ;;  %630 = vmatprep.mubr.bf16.mxu0 %v1806_v48  ;;  %v747_v52 = vadd.s32 %v2135_v10, %v737_v46  ;;  %v916_v46 = vld [vmem:[%s2369_s4] sm:$0xff] }
 0x13f   : > { %1550 = vmatmul.mubr.msk.bf16.vlgmr.msra.gmra.mrb[0].mxu1 %vm484_vm7, %v441_v27 }
 0x140   : > { %671 = vmatprep.mubr.bf16.mxu1 %v1806_v48 }
 0x141   : > { %v468_v53 = vpop.permute.xlu0 %467 }
 0x142   : > { %v480_v54 = vsel %vm475_vm5, %v466_v50, %v468_v53  ;;  %v738_v50 = vadd.s32 896, %v731_v5 }
 0x143   : > { %v502_v58 = vsel %vm488_vm6, %v480_v54, 0  ;;  %v739_v54 = vadd.s32 1024, %v731_v5 }
 0x145   : > { %v470_v55 = vpop.permute.xlu1 %469  ;;  %v472_v56 = vpop.permute.xlu0 %471  ;;  %v749_v11 = vadd.s32 %v2135_v10, %v739_v54 }
 0x146   : > { %v481_v57 = vsel %vm475_vm5, %v468_v53, %v470_v55  ;;  %v482_v59 = vsel %vm475_vm5, %v470_v55, %v472_v56 }
 0x147   : > { %1551 = vmatprep.subr.msk.bf16.mxu0 %vm488_vm6, %v481_v57  ;;  %v508_v0 = vsel %vm488_vm6, %v482_v59, 0 }
 0x148   : > { %599 = vmatpush1.bf16.msra.mxu0 %v502_v58 }
 0x149   : > { %v474_v60 = vpop.permute.xlu1 %473  ;;  %1587 = vmatprep.subr.bf16.mxu0 %v1808_v61 }
 0x14a   : > { %v483_v62 = vsel %vm475_vm5, %v472_v56, %v474_v60  ;;  %v514_v63 = vsel %vm488_vm6, %v474_v60, 0  ;;  %v748_v56 = vadd.s32 %v2135_v10, %v738_v50 }
 0x14b   : > { %1552 = vmatmul.mubr.msk.bf16.vlgmr.msra.gmra.mrb[4].mxu0 %vm484_vm7, %v441_v27  ;;  %1553 = vmatprep.subr.msk.bf16.mxu1 %vm488_vm6, %v483_v62  ;;  %vm762_vm6 = vcmp.lt.s32.totalorder %v744_v19, 2048 }
 0x14c   : > { %640 = vmatpush1.bf16.msra.mxu1 %v508_v0  ;;  %1588 = vmatpush3.bf16.msra.mxu0 %v514_v63 }
 0x14d   : > { %1589 = vmatprep.mubr.msk.bf16.mxu0 %vm1809_vm8, %v1808_v61  ;;  %vm771_vm8 = vmand %vm753_vm4, %vm762_vm6  ;;  %vm757_vm4 = vcmp.ge.s32.totalorder %v748_v56, 0  ;;  %vm766_vm6 = vcmp.lt.s32.totalorder %v748_v56, 2048 }
 0x14f   : > { %1554 = vmatmul.mubr.msk.bf16.vlgmr.msra.gmra.mrb[4].mxu1 %vm484_vm7, %v441_v27 }
 0x150   : > { %982 = vmatprep.mubr.bf16.mxu1 %v1806_v48 }
 0x153   : > { %1590 = vmatmul.mubr.msk.bf16.vlgmr.msra.gmra.mrb[8].mxu0 %vm484_vm7, %v441_v27  ;;  %vm770_vm7 = vmand %vm752_vm15, %vm761_vm0  ;;  %v745_v27 = vadd.s32 %v2135_v10, %v735_v40  ;;  %vm765_vm0 = vcmp.lt.s32.totalorder %v747_v52, 2048 }
 0x154   : > { %1023 = vmatprep.mubr.bf16.mxu0 %v1806_v48  ;;  %vm773_vm15 = vmand %vm755_vm11, %vm764_vm12  ;;  %vm922_vm12 = vcmask 195584  }
 0x155   : > { %vm754_vm9 = vcmp.ge.s32.totalorder %v745_v27, 0  ;;  %vm763_vm10 = vcmp.lt.s32.totalorder %v745_v27, 2048  ;;  %v1123_v27 = vld [vmem:[%s2371_s6] sm:$0xff] }
 0x156   : > { %v2139_v15 = vpop.permute.xlu0 %445 }
 0x20e   : > { %v550_v18 = vpop.f32.mrb[0].mxu0 }
 0x20f   : > { %v552_v20 = vpop.f32.mrb[1].mxu0  ;;  %v551_v22 = vadd.f32 %v550_v18, %v2139_v15 }
 0x210   : > { %v553_v23 = vadd.f32 %v552_v20, %v2139_v15  ;;  %v554_v28 = vpop.f32.mrb[2].mxu0 }
 0x211   : > { %v555_v8 = vpop.f32.mrb[3].mxu0  ;;  %v720_v29 = vmax.f32 %v551_v22, 0.0 }
 0x212   : > { %v721_v31 = vmax.f32 %v553_v23, 0.0  ;;  %v591_v32 = vpop.f32.mrb[0].mxu1 }
 0x213   : > { %v592_v33 = vadd.f32 %v591_v32, %v2139_v15  ;;  %v593_v34 = vpop.f32.mrb[1].mxu1  ;;  %v795_v16 = vsel %vm768_vm13, %v720_v29, 0.0  ;;  %vm2172_vm13 = vmand %vm754_vm9, %vm763_vm10  ;;  %vm758_vm9 = vcmp.ge.s32.totalorder %v749_v11, 0  ;;  %vm767_vm10 = vcmp.lt.s32.totalorder %v749_v11, 2048 }
 0x214   : > { %v796_v35 = vsel %vm769_vm14, %v721_v31, 0.0  ;;  %v594_v36 = vadd.f32 %v593_v34, %v2139_v15  ;;  %v595_v37 = vpop.f32.mrb[2].mxu1  ;;  %v2147_v38 = vpack.c.bf16 %v795_v16, %v795_v16  ;;  %vm756_vm14 = vcmp.ge.s32.totalorder %v747_v52, 0  ;;  %vm776_vm11 = vmand %vm758_vm9, %vm767_vm10 }
 0x215   : > { %v2149_v39 = vpack.c.bf16 %v796_v35, %v796_v35  ;;  %v722_v30 = vmax.f32 %v592_v33, 0.0  ;;  %v596_v24 = vpop.f32.mrb[3].mxu1 }
 0x216   : > { %v723_v41 = vmax.f32 %v594_v36, 0.0  ;;  %857 = vrot.lane.b32.xlu1 %v2147_v38, %s1805_s17  ;;  %v822_v53 = vrot.slane %v2147_v38, 4 }
 0x217   : > { %v797_v43 = vsel %vm770_vm7, %v722_v30, 0.0  ;;  %859 = vrot.lane.b32.xlu0 %v2149_v39, %s1805_s17  ;;  %v823_v63 = vrot.slane %v2149_v39, 4  ;;  %vm774_vm7 = vmand %vm756_vm14, %vm765_vm0 }
 0x218   : > { %v2155_v44 = vpack.c.bf16 %v797_v43, %v797_v43  ;;  %v798_v45 = vsel %vm771_vm8, %v723_v41, 0.0  ;;  %vm775_vm8 = vmand %vm757_vm4, %vm766_vm6 }
 0x219   : > { %v2157_v47 = vpack.c.bf16 %v798_v45, %v798_v45 }
 0x21a   : > { %861 = vrot.lane.b32.xlu1 %v2155_v44, %s1805_s17  ;;  %v824_v51 = vrot.slane %v2155_v44, 4 }
 0x21b   : > { %863 = vrot.lane.b32.xlu0 %v2157_v47, %s1805_s17  ;;  %v825_v5 = vrot.slane %v2157_v47, 4 }
 0x21e   : > { %v632_v55 = vpop.f32.mrb[4].mxu0  ;;  %835 = vrot.lane.b32.xlu1 %v824_v51, %s1804_s13 }
 0x21f   : > { %v633_v57 = vadd.f32 %v632_v55, %v2139_v15  ;;  %v634_v58 = vpop.f32.mrb[5].mxu0  ;;  %831 = vrot.lane.b32.xlu0 %v822_v53, %s1804_s13 }
 0x220   : > { %v635_v60 = vadd.f32 %v634_v58, %v2139_v15  ;;  %v636_v62 = vpop.f32.mrb[6].mxu0 }
 0x221   : > { %v724_v0 = vmax.f32 %v633_v57, 0.0  ;;  %v637_v2 = vpop.f32.mrb[7].mxu0 }
 0x222   : > { %v725_v13 = vmax.f32 %v635_v60, 0.0  ;;  %v673_v12 = vpop.f32.mrb[4].mxu1  ;;  %833 = vrot.lane.b32.xlu1 %v823_v63, %s1804_s13 }
 0x223   : > { %v799_v14 = vsel %vm2172_vm13, %v724_v0, 0.0  ;;  %v674_v4 = vadd.f32 %v673_v12, %v2139_v15  ;;  %v675_v17 = vpop.f32.mrb[5].mxu1  ;;  %837 = vrot.lane.b32.xlu0 %v825_v5, %s1804_s13 }
 0x224   : > { %v2185_v18 = vpack.c.bf16 %v799_v14, %v799_v14  ;;  %v800_v19 = vsel %vm773_vm15, %v725_v13, 0.0  ;;  %v676_v10 = vadd.f32 %v675_v17, %v2139_v15  ;;  %v677_v20 = vpop.f32.mrb[6].mxu1 }
 0x225   : > { %v2189_v22 = vpack.c.bf16 %v800_v19, %v800_v19  ;;  %v726_v23 = vmax.f32 %v674_v4, 0.0  ;;  %v678_v28 = vpop.f32.mrb[7].mxu1 }
 0x226   : > { %v727_v8 = vmax.f32 %v676_v10, 0.0  ;;  %v714_v29 = vpop.f32.mrb[8].mxu0  ;;  %865 = vrot.lane.b32.xlu1 %v2185_v18, %s1805_s17  ;;  %v826_v36 = vrot.slane %v2185_v18, 4 }
 0x227   : > { %v801_v31 = vsel %vm774_vm7, %v726_v23, 0.0  ;;  %v715_v32 = vadd.f32 %v714_v29, %v2139_v15  ;;  %v827_v33 = vrot.slane %v2189_v22, 4  ;;  %v1591_v34 = vpop.f32.mrb[9].mxu0 }
 0x228   : > { %v2195_v16 = vpack.c.bf16 %v801_v31, %v801_v31  ;;  %v802_v35 = vsel %vm775_vm8, %v727_v8, 0.0  ;;  %v717_v37 = vpop.f32.mrb[10].mxu0 }
 0x229   : > { %v728_v30 = vmax.f32 %v715_v32, 0.0  ;;  %841 = vrot.lane.b32.xlu0 %v827_v33, %s1804_s13  ;;  %v1592_v24 = vpop.f32.mrb[11].mxu0  ;;  %v2200_v40 = vpack.c.bf16 %v802_v35, %v802_v35 }
 0x22a   : > { %839 = vrot.lane.b32.xlu1 %v826_v36, %s1804_s13  ;;  %v828_v15 = vrot.slane %v2195_v16, 4 }
 0x22b   : > { %v803_v41 = vsel %vm776_vm11, %v728_v30, 0.0  ;;  %v829_v42 = vrot.slane %v2200_v40, 4 }
 0x22c   : > { %v812_v43 = vpack.c.bf16 %v803_v41, %v803_v41 }
 0x22d   : > { %867 = vrot.lane.b32.xlu0 %v2189_v22, %s1805_s17 }
 0x22e   : > { %843 = vrot.lane.b32.xlu1 %v828_v15, %s1804_s13  ;;  %v830_v45 = vrot.slane %v812_v43, 4 }
 0x231   : > { %845 = vrot.lane.b32.xlu0 %v829_v42, %s1804_s13 }
 0x232   : > { %869 = vrot.lane.b32.xlu1 %v2195_v16, %s1805_s17 }
 0x235   : > { %871 = vrot.lane.b32.xlu0 %v2200_v40, %s1805_s17 }
 0x236   : > { %847 = vrot.lane.b32.xlu1 %v830_v45, %s1804_s13  ;;  %s1703_s13 = scalar_lea.vmem %s2308_s28, 1024 }
 0x237   : > { %p1704_p13 = scmp.ne.s32.totalorder %s2308_s28, %s1703_s13 }
 0x239   : > { %919 = vperm.xlu0 %1672, %v916_v46   ;;  %p1705_p0 = pnand %p1704_p13, %p1902_p3 }
 0x23a   : > { %873 = vrot.lane.b32.xlu1 %v812_v43, %s1805_s17  ;;  %s1810_s17 = smov [#allocation4]  }
 0x23b   : > { %p1706_p1 = pneg %p1705_p0  ;;  %s1707_s18 = sshll.u32 %s1810_s17, 4  ;;  %s1708_s18 = int_to_ptr.vmem [resolvable:$false] %s1707_s18 }
 0x23c   : > { %s1709_s21 = scalar_lea.vmem %s1708_s18, 2048  ;;  %p1710_p2 = scmp.lt.s32.totalorder %s2308_s28, %s1708_s18 }
 0x23d   : > { %p1711_p4 = scmp.lt.s32.totalorder %s1709_s21, %s1703_s13 }
 0x23e   : > { %1126 = vperm.xlu1 %1673, %v1123_v27  }
 0x23f   : > { %p1712_p5 = por %p1711_p4, %p1710_p2 }
 0x241   : > { %p1713_p6 = pnand %p1712_p5, %p1706_p1 }
 0x288   : > { %v858_v49 = vpop.permute.xlu1 %857 }
 0x289   : > { %v860_v50 = vpop.permute.xlu0 %859 }
 0x28a   : > { %v875_v62 = vsel %vm385_vm2, %v858_v49, %v860_v50 }
 0x28b   : > { %v927_v2 = vsel %vm422_vm3, %v875_v62, 0 }
 0x28c   : > { %v862_v51 = vpop.permute.xlu1 %861 }
 0x28d   : > { %v864_v52 = vpop.permute.xlu0 %863  ;;  %v876_v63 = vsel %vm385_vm2, %v860_v50, %v862_v51 }
 0x28e   : > { %v877_v17 = vsel %vm385_vm2, %v862_v51, %v864_v52 }
 0x28f   : > { %v933_v28 = vsel %vm422_vm3, %v877_v17, 0 }
 0x290   : > { %v836_v53 = vpop.permute.xlu1 %835 }
 0x291   : > { %v832_v54 = vpop.permute.xlu0 %831 }
 0x294   : > { %v834_v55 = vpop.permute.xlu1 %833 }
 0x295   : > { %v849_v56 = vsel %vm348_vm1, %v832_v54, %v834_v55  ;;  %v850_v57 = vsel %vm348_vm1, %v834_v55, %v836_v53  ;;  %v838_v60 = vpop.permute.xlu0 %837 }
 0x296   : > { %v889_v58 = vsel %vm422_vm3, %v2149_v39, %v850_v57  ;;  %v885_v59 = vsel %vm422_vm3, %v2147_v38, %v849_v56  ;;  %v851_v11 = vsel %vm348_vm1, %v836_v53, %v838_v60  ;;  %v915_v38 = vld [vmem:[%s2368_s3] sm:$0xf] }
 0x297   : > { %950 = vmatprep.subr.bf16.mxu1 %v889_v58  ;;  %v893_v4 = vsel %vm422_vm3, %v2155_v44, %v851_v11 }
 0x298   : > { %v866_v0 = vpop.permute.xlu1 %865  ;;  %951 = vmatpush1.bf16.msra.mxu1 %v885_v59 }
 0x299   : > { %1557 = vmatprep.subr.msk.bf16.mxu1 %vm422_vm3, %v876_v63  ;;  %v878_v19 = vsel %vm385_vm2, %v864_v52, %v866_v0 }
 0x29b   : > { %v842_v5 = vpop.permute.xlu0 %841 }
 0x29c   : > { %v840_v13 = vpop.permute.xlu1 %839  ;;  %953 = vmatpush1.bf16.msra.mxu1 %v927_v2 }
 0x29d   : > { %v852_v39 = vsel %vm348_vm1, %v838_v60, %v840_v13  ;;  %v853_v10 = vsel %vm348_vm1, %v840_v13, %v842_v5 }
 0x29e   : > { %v897_v12 = vsel %vm422_vm3, %v2157_v47, %v852_v39  ;;  %v901_v8 = vsel %vm422_vm3, %v2185_v18, %v853_v10 }
 0x29f   : > { %1558 = vmatmul.mubr.msk.bf16.vlgmr.msra.gmra.mrb[8].mxu1 %vm922_vm12, %v915_v38  ;;  %991 = vmatprep.subr.bf16.mxu0 %v897_v12  ;;  %v868_v14 = vpop.permute.xlu0 %867 }
 0x2a0   : > { %v844_v20 = vpop.permute.xlu1 %843  ;;  %992 = vmatpush1.bf16.msra.mxu0 %v893_v4  ;;  %1064 = vmatprep.mubr.bf16.mxu1 %v1806_v48  ;;  %v879_v29 = vsel %vm385_vm2, %v866_v0, %v868_v14 }
 0x2a1   : > { %v854_v23 = vsel %vm348_vm1, %v842_v5, %v844_v20  ;;  %1559 = vmatprep.subr.msk.bf16.mxu0 %vm422_vm3, %v878_v19  ;;  %v939_v33 = vsel %vm422_vm3, %v879_v29, 0 }
 0x2a2   : > { %v905_v47 = vsel %vm422_vm3, %v2189_v22, %v854_v23 }
 0x2a3   : > { %1032 = vmatprep.subr.bf16.mxu1 %v905_v47  ;;  %v846_v44 = vpop.permute.xlu0 %845 }
 0x2a4   : > { %v870_v31 = vpop.permute.xlu1 %869  ;;  %994 = vmatpush1.bf16.msra.mxu0 %v933_v28  ;;  %1033 = vmatpush1.bf16.msra.mxu1 %v901_v8  ;;  %v855_v22 = vsel %vm348_vm1, %v844_v20, %v846_v44 }
 0x2a5   : > { %v880_v32 = vsel %vm385_vm2, %v868_v14, %v870_v31  ;;  %v909_v37 = vsel %vm422_vm3, %v2195_v16, %v855_v22  ;;  %v1122_v16 = vld [vmem:[%s2370_s5] sm:$0xff] }
 0x2a6   : > { %1561 = vmatprep.subr.msk.bf16.mxu1 %vm422_vm3, %v880_v32 }
 0x2a7   : > { %1560 = vmatmul.mubr.msk.bf16.vlgmr.msra.gmra.mrb[12].mxu0 %vm922_vm12, %v915_v38  ;;  %v872_v18 = vpop.permute.xlu0 %871 }
 0x2a8   : > { %v848_v34 = vpop.permute.xlu1 %847  ;;  %1035 = vmatpush1.bf16.msra.mxu1 %v939_v33  ;;  %1105 = vmatprep.mubr.bf16.mxu0 %v1806_v48  ;;  %v881_v30 = vsel %vm385_vm2, %v870_v31, %v872_v18 }
 0x2a9   : > { %v856_v35 = vsel %vm348_vm1, %v846_v44, %v848_v34  ;;  %1565 = vmatprep.subr.msk.mxu1 %vm422_vm3, %v1944_v1  ;;  %v945_v1 = vsel %vm422_vm3, %v881_v30, 0 }
 0x2aa   : > { %v913_v36 = vsel %vm422_vm3, %v2200_v40, %v856_v35 }
 0x2ab   : > { %1562 = vmatmul.mubr.msk.bf16.vlgmr.msra.gmra.mrb[12].mxu1 %vm922_vm12, %v915_v38  ;;  %1073 = vmatprep.subr.bf16.mxu0 %v913_v36 }
 0x2ac   : > { %v874_v24 = vpop.permute.xlu1 %873  ;;  %1074 = vmatpush1.bf16.msra.mxu0 %v909_v37  ;;  %1566 = vmatpush1.msk.msra.mxu1 %vm422_vm3, %v1956_v6 }
 0x2ad   : > { %v882_v48 = vsel %vm385_vm2, %v872_v18, %v874_v24  ;;  %1213 = vmatprep.mubr.f32.mxu1 %v1808_v61  ;;  %1568 = vmatprep.subr.msk.mxu1 %vm422_vm3, %v1948_v3 }
 0x2ae   : > { %1563 = vmatprep.subr.msk.bf16.mxu0 %vm422_vm3, %v882_v48 }
 0x2b0   : > { %1076 = vmatpush1.bf16.msra.mxu0 %v945_v1 }
 0x2b1   : > { %1571 = vmatprep.subr.msk.mxu0 %vm422_vm3, %v1997_v21 }
 0x2b3   : > { %1564 = vmatmul.mubr.msk.bf16.vlgmr.msra.gmra.mrb[16].mxu0 %vm922_vm12, %v915_v38  ;;  %1567 = vmatmul.mubr.msk.f32.vlgmr.msra.gmra.mrb[16].mxu1 %vm475_vm5, %v1122_v16 }
 0x2b4   : > { %1569 = vmatpush1.msk.msra.mxu1 %vm422_vm3, %v1960_v7  ;;  %1284 = vmatprep.mubr.f32.mxu1 %v1808_v61 }
 0x2b5   : > { %1572 = vmatpush1.msk.msra.mxu0 %vm422_vm3, %v1968_v9  ;;  %1574 = vmatprep.subr.msk.mxu1 %vm422_vm3, %v2008_v25 }
 0x2b6   : > { %1355 = vmatprep.mubr.f32.mxu0 %v1808_v61 }
 0x2b7   : > { %1570 = vmatmul.mubr.msk.f32.vlgmr.msra.gmra.mrb[18].mxu1 %vm475_vm5, %v1122_v16 }
 0x2b8   : > { %1575 = vmatpush1.msk.msra.mxu1 %vm422_vm3, %v2012_v26  ;;  %1426 = vmatprep.mubr.f32.mxu1 %v1808_v61  ;;  %v920_v46 = vpop.permute.xlu0 %919 }
 0x2bb   : > { %1573 = vmatmul.mubr.msk.f32.vlgmr.msra.gmra.mrb[20].mxu0 %vm475_vm5, %v1122_v16  ;;  %1576 = vmatmul.mubr.msk.f32.vlgmr.msra.gmra.mrb[20].mxu1 %vm475_vm5, %v1122_v16 }
 0x2bd   : > { %v1127_v27 = vpop.permute.xlu1 %1126 }
 0x372   : > { %v984_v3 = vpop.f32.mrb[8].mxu1 }
 0x373   : > { %v986_v6 = vpop.f32.mrb[9].mxu1  ;;  %v985_v26 = vadd.f32 %v984_v3, %v920_v46 }
 0x374   : > { %v988_v7 = vpop.f32.mrb[10].mxu1  ;;  %v987_v61 = vadd.f32 %v986_v6, %v920_v46 }
 0x375   : > { %v989_v9 = vpop.f32.mrb[11].mxu1  ;;  %v1114_v51 = vmax.f32 %v985_v26, 0.0 }
 0x376   : > { %v1115_v56 = vmax.f32 %v987_v61, 0.0 }
 0x37a   : > { %v1025_v21 = vpop.f32.mrb[12].mxu0 }
 0x37b   : > { %v1027_v40 = vpop.f32.mrb[13].mxu0  ;;  %v1026_v52 = vadd.f32 %v1025_v21, %v920_v46 }
 0x37c   : > { %v1029_v25 = vpop.f32.mrb[14].mxu0  ;;  %v1028_v57 = vadd.f32 %v1027_v40, %v920_v46 }
 0x37d   : > { %v1030_v41 = vpop.f32.mrb[15].mxu0  ;;  %v1116_v2 = vmax.f32 %v1026_v52, 0.0 }
 0x37e   : > { %v1066_v15 = vpop.f32.mrb[12].mxu1  ;;  %v1117_v39 = vmax.f32 %v1028_v57, 0.0 }
 0x37f   : > { %v1068_v42 = vpop.f32.mrb[13].mxu1  ;;  %v1067_v5 = vadd.f32 %v1066_v15, %v920_v46 }
 0x380   : > { %v1070_v43 = vpop.f32.mrb[14].mxu1  ;;  %v1069_v12 = vadd.f32 %v1068_v42, %v920_v46 }
 0x381   : > { %v1071_v45 = vpop.f32.mrb[15].mxu1  ;;  %v1118_v23 = vmax.f32 %v1067_v5, 0.0 }
 0x382   : > { %v1119_v31 = vmax.f32 %v1069_v12, 0.0 }
 0x386   : > { %v1107_v49 = vpop.f32.mrb[16].mxu0  ;;  %v1215_v50 = vpop.f32.mrb[16].mxu1 }
 0x387   : > { %v1216_v53 = vadd.f32 %v1215_v50, %v1127_v27  ;;  %v1109_v54 = vpop.f32.mrb[17].mxu0  ;;  %v1217_v55 = vpop.f32.mrb[17].mxu1  ;;  %v1108_v11 = vadd.f32 %v1107_v49, %v920_v46 }
 0x388   : > { %v1218_v58 = vadd.f32 %v1217_v55, %v1127_v27  ;;  %v1111_v59 = vpop.f32.mrb[18].mxu0  ;;  %v1110_v14 = vadd.f32 %v1109_v54, %v920_v46 }
 0x389   : > { %v1433_v60 = vadd.f32 %v1216_v53, %v1114_v51  ;;  %v1112_v62 = vpop.f32.mrb[19].mxu0  ;;  %v1120_v47 = vmax.f32 %v1108_v11, 0.0 }
 0x38a   : > { %v1434_v63 = vadd.f32 %v1218_v58, %v1115_v56  ;;  %v1286_v0 = vpop.f32.mrb[18].mxu1  ;;  %v1121_v32 = vmax.f32 %v1110_v14, 0.0 }
 0x38b   : > { %1441 = vst [vmem:[%s1925_s22] sm:$0xff] %v1433_v60  ;;  %v1287_v13 = vadd.f32 %v1286_v0, %v1127_v27  ;;  %v1288_v38 = vpop.f32.mrb[19].mxu1 }
 0x38c   : > { %1442 = vst [vmem:[%s1925_s22 + $0x8] sm:$0xff] %v1434_v63  ;;  %v1289_v4 = vadd.f32 %v1288_v38, %v1127_v27 }
 0x38d   : > { %v1435_v17 = vadd.f32 %v1287_v13, %v1116_v2 }
 0x38e   : > { %v1436_v19 = vadd.f32 %v1289_v4, %v1117_v39  ;;  %v1357_v10 = vpop.f32.mrb[20].mxu0  ;;  %v1428_v20 = vpop.f32.mrb[20].mxu1 }
 0x38f   : > { %1443 = vst [vmem:[%s1925_s22 + $0x10] sm:$0xff] %v1435_v17  ;;  %v1358_v28 = vadd.f32 %v1357_v10, %v1127_v27  ;;  %v1429_v44 = vadd.f32 %v1428_v20, %v1127_v27  ;;  %v1359_v8 = vpop.f32.mrb[21].mxu0  ;;  %v1430_v29 = vpop.f32.mrb[21].mxu1 }
 0x390   : > { %1444 = vst [vmem:[%s1925_s22 + $0x18] sm:$0xff] %v1436_v19  ;;  %v1360_v33 = vadd.f32 %v1359_v8, %v1127_v27  ;;  %v1431_v22 = vadd.f32 %v1430_v29, %v1127_v27 }
 0x391   : > { %v1437_v34 = vadd.f32 %v1358_v28, %v1118_v23  ;;  %v1439_v18 = vadd.f32 %v1429_v44, %v1120_v47 }
 0x392   : > { %v1438_v35 = vadd.f32 %v1360_v33, %v1119_v31  ;;  %v1440_v36 = vadd.f32 %v1431_v22, %v1121_v32 }
 0x393   : > { %1445 = vst [vmem:[%s1925_s22 + $0x20] sm:$0xff] %v1437_v34  ;;  %1447 = vst [vmem:[%s1925_s22 + $0x30] sm:$0xff] %v1439_v18 }
 0x394   : > { %1446 = vst [vmem:[%s1925_s22 + $0x28] sm:$0xff] %v1438_v35  ;;  %1448 = vst [vmem:[%s1925_s22 + $0x38] sm:$0xff] %v1440_v36 }
 0x395   : > { %1716 = shalt.err (!%p1713_p6)
}
 0x396   : > { %s1717_s22 = scalar_lea.hbm %s2306_s11, 1024  ;;  %s1721_s10 = scalar_lea.hbm %s2372_s7, 4096 }
 0x397   : > { %p1718_p7 = scmp.ne.s32.totalorder %s2306_s11, %s1717_s22  ;;  %p1722_p11 = scmp.lt.u32.totalorder %s2306_s11, %s2372_s7 }
 0x398   : > { %p1723_p12 = scmp.lt.u32.totalorder %s1721_s10, %s1717_s22  ;;  %p1725_p0 = scmp.lt.u32.totalorder %s1717_s22, %s2306_s11 }
 0x399   : > { %p1719_p9 = pnand %p1718_p7, %p1902_p3 }
 0x39a   : > { %p1724_p13 = por %p1723_p12, %p1722_p11 }
 0x39b   : > { %p1720_p10 = pneg %p1719_p9 }
 0x39c   : > { %p1726_p1 = por %p1725_p0, %p1724_p13 }
 0x39e   : > { %p1727_p2 = pnand %p1726_p1, %p1720_p10 }
 0x3a0   : > { %1730 = shalt.err (!%p1727_p2)
}
 0x3a1   : > { %1593 = dma.vmem_to_hbm [thread:$0]  (%p1902_p3), %s2308_s28, 1024, %s2306_s11, %s1450_s20  }
 0x3a2 PF: > { %p1599_p4 = scmp.ge.s32.totalorder %s1799_s8, 2  ;;  %s1478_s30 = sand.u32 1, %s1771_s24  }
 0x3a3   : > { %s1479_s12 = scalar_lea.sflag [#allocation5], %s1478_s30 }
 0x3a4   : > { %p1596_p5 = pnand %p1599_p4, %p1911_p8 }
 0x3a6   : > { %1766 = dma.done.wait (!%p1596_p5), %s1479_s12, 1024  }
 0x3a7   : > { %1768 = vsyncadd (!%p1596_p5), %s1479_s12, 4294966272  ;;  %s20_s8 = sadd.s32 1, %s1799_s8   ;;  %s2385_s28 = sld [smem:[#allocation12_spill]] }
 0x3a8   : > { %p17_p6 = scmp.ge.s32.totalorder %s20_s8, 6   ;;  %s2386_s14 = sld [smem:[#allocation13_spill]] }
 0x3a9   : > { %s2387_s30 = sld [smem:[#allocation14_spill]]  ;;  %s2388_s24 = smov %s1775_s25 }
 0x3aa   : > { %s2389_s25 = smov %s1779_s26  ;;  %s2390_s26 = smov %s1920_s19 }
 0x3ab   : > { %s2391_s27 = smov %s1791_s29  ;;  %19 = sbr.rel (!%p17_p6) target bundleno = 5 (0x5), region = 87 }
 0x3ae   : > { %s2392_s29 = smov %s2386_s14 }
 0x3b2   :  { %1484 = vsyncpa [#allocation5], 1 }
 0x3b3   :  { %1486 = vsyncpa [#allocation5 + $0x1], 1 }
 0x3b4   :  { %1487 = vsyncmov [#allocation3] }
 0x3b7   :  { %s1488_s15 = vpop.sfrf %1487 }
 0x3b8   :  { %p1583_p3 = scmp.ne.s32.totalorder %s1488_s15, 0 }
 0x3ba   :  { %1492 = shalt.err (%p1583_p3)  }

</bundles_post_ra>
